<compile_context>
chip_gen: v7x
topology: tpu7x:2x2x1
jax: 0.10.0
libtpu: 0.0.40
codegen_flags: <defaults>
</compile_context>

<pallas_src>
import functools

import jax
import jax.numpy as jnp
from jax.experimental import pallas as pl
from jax.experimental.pallas import tpu as pltpu

_LANE = 128
_SUBLANE = 8


def _round_up(n, m):
    return (n + m - 1) // m * m


def _select_tile_b(B):
    # Aim for >=2 grid steps when the batch allows it (v7x megacore sharding
    # of the "parallel" axis); large cap keeps per-step overhead amortized.
    if B >= 16:
        return min(2048, _round_up(-(-B // 2), _SUBLANE))
    return max(_SUBLANE, _round_up(B, _SUBLANE))


def _autoencoder_kernel(x_ref, w0_ref, wpack_ref, bpack_ref, out_ref, *, acts):
    """Fused MLP autoencoder forward over one batch tile.

    x_ref:     (tile_b, D)        input rows (true input width)
    w0_ref:    (D, P)             layer-0 weight (bf16 or f32)
    wpack_ref: (L-1, P, P)        layers 1..L-1 weights, packed
    bpack_ref: (L, 1, P)          all biases, f32
    acts[i] in {"leaky", "relu", "none"}:
      "leaky" -> LeakyReLU(0.1); "relu" -> ReLU (covers relu(leaky(x)) at the
      bottleneck); "none" -> identity (final decoder Linear).
    """
    h = x_ref[...].astype(jnp.float32)
    for li, act in enumerate(acts):
        w = w0_ref[...] if li == 0 else wpack_ref[li - 1]
        b = bpack_ref[li]                                   # (1, P) f32
        h = jnp.dot(h.astype(w.dtype), w,
                    preferred_element_type=jnp.float32) + b
        if act == "leaky":
            h = jnp.maximum(h, 0.1 * h)                     # single VPU max
        elif act == "relu":
            h = jnp.maximum(h, 0.0)
    out_ref[...] = h.astype(out_ref.dtype)


@functools.partial(jax.jit, static_argnames=("acts", "out_dim", "tile_b"))
def _forward_padded(x, w0, wpack, bpack, *, acts, out_dim, tile_b):
    B, D = x.shape
    P = w0.shape[1]
    L = len(acts)

    if tile_b is None:
        tile_b = _select_tile_b(B)
    tile_b = _round_up(tile_b, _SUBLANE)
    B_pad = _round_up(B, tile_b)
    x_p = x if B_pad == B else jnp.pad(x, ((0, B_pad - B), (0, 0)))
    grid = (B_pad // tile_b,)

    kernel = functools.partial(_autoencoder_kernel, acts=acts)
    out = pl.pallas_call(
        kernel,
        out_shape=jax.ShapeDtypeStruct((B_pad, P), x.dtype),
        grid=grid,
        in_specs=[
            pl.BlockSpec((tile_b, D), lambda i: (i, 0)),
            pl.BlockSpec((D, P), lambda i: (0, 0)),
            pl.BlockSpec((L - 1, P, P), lambda i: (0, 0, 0)),
            pl.BlockSpec((L, 1, P), lambda i: (0, 0, 0)),
        ],
        out_specs=pl.BlockSpec((tile_b, P), lambda i: (i, 0)),
        compiler_params=pltpu.CompilerParams(
            dimension_semantics=("parallel",)),
    )(x_p, w0, wpack, bpack)

    # Drop batch / lane padding (fused into the same jit dispatch).
    return out[:B, :out_dim]


def prepare_params(params, acts, *, compute_dtype=jnp.bfloat16):
    """Pad/pack parameters ONCE (outside the hot path).

    params: list of (W, b) with W: (in, out), b: (1, out)  (unpadded, f32)
    Returns a dict consumed by autoencoder_forward.
    """
    L = len(params)
    input_dim = params[0][0].shape[0]
    out_dim = params[-1][0].shape[1]

    # Common 128-lane-padded width for every non-input feature dim; layer 0
    # keeps its true input width so x never needs a lane-padding pass.
    feat_dims = [w.shape[1] for w, _ in params] + [w.shape[0] for w, _ in params[1:]]
    P = _round_up(max(feat_dims), _LANE)

    w0 = jnp.pad(params[0][0],
                 ((0, 0), (0, P - params[0][0].shape[1]))).astype(compute_dtype)

    wlist = []
    for w, _ in params[1:]:
        din, dout = w.shape
        wlist.append(jnp.pad(w, ((0, P - din), (0, P - dout))).astype(compute_dtype))
    wpack = jnp.stack(wlist, axis=0)                       # (L-1, P, P)

    blist = []
    for _, b in params:
        b2 = b.reshape(1, -1)
        blist.append(jnp.pad(b2, ((0, 0), (0, P - b2.shape[1]))))
    bpack = jnp.stack(blist, axis=0).astype(jnp.float32)   # (L, 1, P)

    # Collapse ("leaky","relu") -> "relu"; () -> "none".
    fused = []
    for a in acts:
        if "relu" in a:
            fused.append("relu")
        elif "leaky" in a:
            fused.append("leaky")
        else:
            fused.append("none")

    return {
        "w0": w0, "wpack": wpack, "bpack": bpack,
        "acts": tuple(fused), "out_dim": out_dim, "input_dim": input_dim,
    }


def autoencoder_forward(x, prepared, *, tile_b=None):
    """Fused autoencoder forward.  x: (B, input_dim)."""
    return _forward_padded(
        x, prepared["w0"], prepared["wpack"], prepared["bpack"],
        acts=prepared["acts"], out_dim=prepared["out_dim"], tile_b=tile_b)


def build_autoencoder_params(key, input_dim, hidden_dims, encoding_dim):
    """Deterministic parameter init mirroring AutoencoderBase.__init__ shapes."""
    dims = list(hidden_dims) + [encoding_dim]

    # Encoder: input_dim -> h1 -> ... -> encoding_dim, LeakyReLU(0.1) each;
    # forward() applies an extra ReLU after the whole encoder.
    # Decoder: encoding_dim -> ... -> h1 (LeakyReLU each) -> input_dim (no act).
    layer_dims = []
    prev = input_dim
    for h in dims:
        layer_dims.append((prev, h))
        prev = h
    rdims = list(reversed(dims))
    for i in range(len(rdims) - 1):
        layer_dims.append((rdims[i], rdims[i + 1]))
    layer_dims.append((rdims[-1], input_dim))

    n_enc = len(dims)
    acts = []
    for li in range(len(layer_dims)):
        if li < n_enc - 1:
            acts.append(("leaky",))
        elif li == n_enc - 1:
            acts.append(("leaky", "relu"))      # encoder LeakyReLU + F.relu
        elif li < len(layer_dims) - 1:
            acts.append(("leaky",))
        else:
            acts.append(())                     # final decoder Linear, no act

    params = []
    for (din, dout) in layer_dims:
        key, kw, kb = jax.random.split(key, 3)
        bound = 1.0 / jnp.sqrt(float(din))
        w = jax.random.uniform(kw, (din, dout), jnp.float32, -bound, bound)
        b = jax.random.uniform(kb, (1, dout), jnp.float32, -bound, bound)
        params.append((w, b))
    return params, acts


def autoencoder_reference(x, params, acts, matmul_dtype=None):
    """Pure-JAX reference matching the PyTorch forward (unfused activations).

    matmul_dtype=None          -> full f32 math (PyTorch-exact semantics)
    matmul_dtype=jnp.bfloat16  -> bf16 matmul operands + f32 accumulation,
                                  matching the kernel's numerics.
    """
    h = x
    for (w, b), layer_acts in zip(params, acts):
        if matmul_dtype is not None:
            h = jnp.dot(h.astype(matmul_dtype), w.astype(matmul_dtype),
                        preferred_element_type=jnp.float32) + b
        else:
            h = h @ w + b
        if "leaky" in layer_acts:
            h = jnp.where(h > 0, h, 0.1 * h)
        if "relu" in layer_acts:
            h = jnp.maximum(h, 0.0)
    return h


if __name__ == "__main__":
    key = jax.random.PRNGKey(0)
    k_x, k_x2, k_p = jax.random.split(key, 3)

    input_dim = 64
    hidden_dims = [64, 48]
    encoding_dim = 32
    params, acts = build_autoencoder_params(k_p, input_dim, hidden_dims, encoding_dim)
    prepared = prepare_params(params, acts)        # padded + bf16-cast ONCE

    # Case 1: aligned batch (grid of 2 tiles -> both v7x cores busy).
    x = jax.random.normal(k_x, (128, input_dim), jnp.float32)
    out = jax.block_until_ready(autoencoder_forward(x, prepared))
    assert out.shape == (128, input_dim)
    ref_bf16 = autoencoder_reference(x, params, acts, matmul_dtype=jnp.bfloat16)
    ref_f32 = autoencoder_reference(x, params, acts)
    assert jnp.allclose(out, ref_bf16, atol=2e-3, rtol=2e-3), "mismatch vs bf16 ref"
    rel = jnp.linalg.norm(out - ref_f32) / jnp.linalg.norm(ref_f32)
    assert rel < 5e-2, f"drift vs f32 reference too large: {rel}"

    # Case 2: non-divisible batch (exercises the row-padding tail path).
    x2 = jax.random.normal(k_x2, (100, input_dim), jnp.float32)
    out2 = jax.block_until_ready(autoencoder_forward(x2, prepared))
    assert out2.shape == (100, input_dim)
    ref2 = autoencoder_reference(x2, params, acts, matmul_dtype=jnp.bfloat16)
    assert jnp.allclose(out2, ref2, atol=2e-3, rtol=2e-3), "mismatch (tail batch)"

    print("KERNEL_OK")
</pallas_src>

<mosaic_0001>
module attributes {stable_mosaic.version = 11 : i64} {
  func.func @_autoencoder_kernel(%arg0: i32, %arg1: memref<64x64xf32, #tpu.memory_space<vmem>>, %arg2: memref<64x128xbf16, #tpu.memory_space<vmem>>, %arg3: memref<5x128x128xbf16, #tpu.memory_space<vmem>>, %arg4: memref<6x1x128xf32, #tpu.memory_space<vmem>>, %arg5: memref<64x128xf32, #tpu.memory_space<vmem>>) attributes {dimension_semantics = [#tpu.dimension_semantics<parallel>], iteration_bounds = array<i64: 2>, scalar_prefetch = 0 : i64, scratch_operands = 0 : i64, tpu.core_type = #tpu.core_type<tc>, window_params = [{transform_indices = @transform_0, window_bounds = array<i64: 64, 64>}, {pipeline_mode = #tpu.pipeline_mode<synchronous>, transform_indices = @transform_1, window_bounds = array<i64: 64, 128>}, {pipeline_mode = #tpu.pipeline_mode<synchronous>, transform_indices = @transform_2, window_bounds = array<i64: 5, 128, 128>}, {pipeline_mode = #tpu.pipeline_mode<synchronous>, transform_indices = @transform_3, window_bounds = array<i64: 6, 1, 128>}, {transform_indices = @transform_4, window_bounds = array<i64: 64, 128>}]} {
    %c0 = arith.constant 0 : index
    %c0_0 = arith.constant 0 : index
    %0 = vector.load %arg1[%c0, %c0_0] : memref<64x64xf32, #tpu.memory_space<vmem>>, vector<64x64xf32>
    %c0_1 = arith.constant 0 : index
    %c0_2 = arith.constant 0 : index
    %1 = vector.load %arg2[%c0_1, %c0_2] : memref<64x128xbf16, #tpu.memory_space<vmem>>, vector<64x128xbf16>
    %c0_3 = arith.constant 0 : index
    %c0_4 = arith.constant 0 : index
    %c0_5 = arith.constant 0 : index
    %2 = vector.load %arg4[%c0_3, %c0_4, %c0_5] : memref<6x1x128xf32, #tpu.memory_space<vmem>>, vector<1x1x128xf32>
    %3 = vector.shape_cast %2 : vector<1x1x128xf32> to vector<1x128xf32>
    %4 = arith.truncf %0 : vector<64x64xf32> to vector<64x64xbf16>
    %cst = arith.constant dense<0.000000e+00> : vector<64x128xf32>
    %5 = tpu.matmul %4, %1, %cst {dimension_numbers = #tpu.dot_dimension_numbers<[1], [0], [0], [1], [0, 0, 1, 1], [], []>} : vector<64x64xbf16>, vector<64x128xbf16>, vector<64x128xf32> -> vector<64x128xf32>
    %6 = vector.broadcast %3 : vector<1x128xf32> to vector<64x128xf32>
    %7 = arith.addf %5, %6 : vector<64x128xf32>
    %cst_6 = arith.constant 1.000000e-01 : f32
    %8 = vector.broadcast %cst_6 : f32 to vector<64x128xf32>
    %9 = arith.mulf %8, %7 : vector<64x128xf32>
    %10 = arith.maximumf %7, %9 : vector<64x128xf32>
    %c0_7 = arith.constant 0 : index
    %c0_8 = arith.constant 0 : index
    %c0_9 = arith.constant 0 : index
    %11 = vector.load %arg3[%c0_7, %c0_8, %c0_9] : memref<5x128x128xbf16, #tpu.memory_space<vmem>>, vector<1x128x128xbf16>
    %12 = vector.shape_cast %11 : vector<1x128x128xbf16> to vector<128x128xbf16>
    %c1 = arith.constant 1 : index
    %c0_10 = arith.constant 0 : index
    %c0_11 = arith.constant 0 : index
    %13 = vector.load %arg4[%c1, %c0_10, %c0_11] : memref<6x1x128xf32, #tpu.memory_space<vmem>>, vector<1x1x128xf32>
    %14 = vector.shape_cast %13 : vector<1x1x128xf32> to vector<1x128xf32>
    %15 = arith.truncf %10 : vector<64x128xf32> to vector<64x128xbf16>
    %cst_12 = arith.constant dense<0.000000e+00> : vector<64x128xf32>
    %16 = tpu.matmul %15, %12, %cst_12 {dimension_numbers = #tpu.dot_dimension_numbers<[1], [0], [0], [1], [0, 0, 1, 1], [], []>} : vector<64x128xbf16>, vector<128x128xbf16>, vector<64x128xf32> -> vector<64x128xf32>
    %17 = vector.broadcast %14 : vector<1x128xf32> to vector<64x128xf32>
    %18 = arith.addf %16, %17 : vector<64x128xf32>
    %cst_13 = arith.constant 1.000000e-01 : f32
    %19 = vector.broadcast %cst_13 : f32 to vector<64x128xf32>
    %20 = arith.mulf %19, %18 : vector<64x128xf32>
    %21 = arith.maximumf %18, %20 : vector<64x128xf32>
    %c1_14 = arith.constant 1 : index
    %c0_15 = arith.constant 0 : index
    %c0_16 = arith.constant 0 : index
    %22 = vector.load %arg3[%c1_14, %c0_15, %c0_16] : memref<5x128x128xbf16, #tpu.memory_space<vmem>>, vector<1x128x128xbf16>
    %23 = vector.shape_cast %22 : vector<1x128x128xbf16> to vector<128x128xbf16>
    %c2 = arith.constant 2 : index
    %c0_17 = arith.constant 0 : index
    %c0_18 = arith.constant 0 : index
    %24 = vector.load %arg4[%c2, %c0_17, %c0_18] : memref<6x1x128xf32, #tpu.memory_space<vmem>>, vector<1x1x128xf32>
    %25 = vector.shape_cast %24 : vector<1x1x128xf32> to vector<1x128xf32>
    %26 = arith.truncf %21 : vector<64x128xf32> to vector<64x128xbf16>
    %cst_19 = arith.constant dense<0.000000e+00> : vector<64x128xf32>
    %27 = tpu.matmul %26, %23, %cst_19 {dimension_numbers = #tpu.dot_dimension_numbers<[1], [0], [0], [1], [0, 0, 1, 1], [], []>} : vector<64x128xbf16>, vector<128x128xbf16>, vector<64x128xf32> -> vector<64x128xf32>
    %28 = vector.broadcast %25 : vector<1x128xf32> to vector<64x128xf32>
    %29 = arith.addf %27, %28 : vector<64x128xf32>
    %cst_20 = arith.constant 0.000000e+00 : f32
    %30 = vector.broadcast %cst_20 : f32 to vector<64x128xf32>
    %31 = arith.maximumf %29, %30 : vector<64x128xf32>
    %c2_21 = arith.constant 2 : index
    %c0_22 = arith.constant 0 : index
    %c0_23 = arith.constant 0 : index
    %32 = vector.load %arg3[%c2_21, %c0_22, %c0_23] : memref<5x128x128xbf16, #tpu.memory_space<vmem>>, vector<1x128x128xbf16>
    %33 = vector.shape_cast %32 : vector<1x128x128xbf16> to vector<128x128xbf16>
    %c3 = arith.constant 3 : index
    %c0_24 = arith.constant 0 : index
    %c0_25 = arith.constant 0 : index
    %34 = vector.load %arg4[%c3, %c0_24, %c0_25] : memref<6x1x128xf32, #tpu.memory_space<vmem>>, vector<1x1x128xf32>
    %35 = vector.shape_cast %34 : vector<1x1x128xf32> to vector<1x128xf32>
    %36 = arith.truncf %31 : vector<64x128xf32> to vector<64x128xbf16>
    %cst_26 = arith.constant dense<0.000000e+00> : vector<64x128xf32>
    %37 = tpu.matmul %36, %33, %cst_26 {dimension_numbers = #tpu.dot_dimension_numbers<[1], [0], [0], [1], [0, 0, 1, 1], [], []>} : vector<64x128xbf16>, vector<128x128xbf16>, vector<64x128xf32> -> vector<64x128xf32>
    %38 = vector.broadcast %35 : vector<1x128xf32> to vector<64x128xf32>
    %39 = arith.addf %37, %38 : vector<64x128xf32>
    %cst_27 = arith.constant 1.000000e-01 : f32
    %40 = vector.broadcast %cst_27 : f32 to vector<64x128xf32>
    %41 = arith.mulf %40, %39 : vector<64x128xf32>
    %42 = arith.maximumf %39, %41 : vector<64x128xf32>
    %c3_28 = arith.constant 3 : index
    %c0_29 = arith.constant 0 : index
    %c0_30 = arith.constant 0 : index
    %43 = vector.load %arg3[%c3_28, %c0_29, %c0_30] : memref<5x128x128xbf16, #tpu.memory_space<vmem>>, vector<1x128x128xbf16>
    %44 = vector.shape_cast %43 : vector<1x128x128xbf16> to vector<128x128xbf16>
    %c4 = arith.constant 4 : index
    %c0_31 = arith.constant 0 : index
    %c0_32 = arith.constant 0 : index
    %45 = vector.load %arg4[%c4, %c0_31, %c0_32] : memref<6x1x128xf32, #tpu.memory_space<vmem>>, vector<1x1x128xf32>
    %46 = vector.shape_cast %45 : vector<1x1x128xf32> to vector<1x128xf32>
    %47 = arith.truncf %42 : vector<64x128xf32> to vector<64x128xbf16>
    %cst_33 = arith.constant dense<0.000000e+00> : vector<64x128xf32>
    %48 = tpu.matmul %47, %44, %cst_33 {dimension_numbers = #tpu.dot_dimension_numbers<[1], [0], [0], [1], [0, 0, 1, 1], [], []>} : vector<64x128xbf16>, vector<128x128xbf16>, vector<64x128xf32> -> vector<64x128xf32>
    %49 = vector.broadcast %46 : vector<1x128xf32> to vector<64x128xf32>
    %50 = arith.addf %48, %49 : vector<64x128xf32>
    %cst_34 = arith.constant 1.000000e-01 : f32
    %51 = vector.broadcast %cst_34 : f32 to vector<64x128xf32>
    %52 = arith.mulf %51, %50 : vector<64x128xf32>
    %53 = arith.maximumf %50, %52 : vector<64x128xf32>
    %c4_35 = arith.constant 4 : index
    %c0_36 = arith.constant 0 : index
    %c0_37 = arith.constant 0 : index
    %54 = vector.load %arg3[%c4_35, %c0_36, %c0_37] : memref<5x128x128xbf16, #tpu.memory_space<vmem>>, vector<1x128x128xbf16>
    %55 = vector.shape_cast %54 : vector<1x128x128xbf16> to vector<128x128xbf16>
    %c5 = arith.constant 5 : index
    %c0_38 = arith.constant 0 : index
    %c0_39 = arith.constant 0 : index
    %56 = vector.load %arg4[%c5, %c0_38, %c0_39] : memref<6x1x128xf32, #tpu.memory_space<vmem>>, vector<1x1x128xf32>
    %57 = vector.shape_cast %56 : vector<1x1x128xf32> to vector<1x128xf32>
    %58 = arith.truncf %53 : vector<64x128xf32> to vector<64x128xbf16>
    %cst_40 = arith.constant dense<0.000000e+00> : vector<64x128xf32>
    %59 = tpu.matmul %58, %55, %cst_40 {dimension_numbers = #tpu.dot_dimension_numbers<[1], [0], [0], [1], [0, 0, 1, 1], [], []>} : vector<64x128xbf16>, vector<128x128xbf16>, vector<64x128xf32> -> vector<64x128xf32>
    %60 = vector.broadcast %57 : vector<1x128xf32> to vector<64x128xf32>
    %61 = arith.addf %59, %60 : vector<64x128xf32>
    %c0_41 = arith.constant 0 : index
    %c0_42 = arith.constant 0 : index
    %62 = vector.load %arg5[%c0_41, %c0_42] : memref<64x128xf32, #tpu.memory_space<vmem>>, vector<64x128xf32>
    tpu.vector_store %arg5[%c0_41, %c0_42], %61 {strides = array<i32>} : memref<64x128xf32, #tpu.memory_space<vmem>>, vector<64x128xf32>,
    return
  }
  func.func @transform_0(%arg0: i32) -> (i32, i32) {
    %c0_i32 = arith.constant 0 : i32
    %c0_i32_0 = arith.constant 0 : i32
    return %arg0, %c0_i32 : i32, i32
  }
  func.func @transform_1(%arg0: i32) -> (i32, i32) {
    %c0_i32 = arith.constant 0 : i32
    %c0_i32_0 = arith.constant 0 : i32
    %c0_i32_1 = arith.constant 0 : i32
    return %c0_i32, %c0_i32_0 : i32, i32
  }
  func.func @transform_2(%arg0: i32) -> (i32, i32, i32) {
    %c0_i32 = arith.constant 0 : i32
    %c0_i32_0 = arith.constant 0 : i32
    %c0_i32_1 = arith.constant 0 : i32
    %c0_i32_2 = arith.constant 0 : i32
    return %c0_i32, %c0_i32_0, %c0_i32_1 : i32, i32, i32
  }
  func.func @transform_3(%arg0: i32) -> (i32, i32, i32) {
    %c0_i32 = arith.constant 0 : i32
    %c0_i32_0 = arith.constant 0 : i32
    %c0_i32_1 = arith.constant 0 : i32
    %c0_i32_2 = arith.constant 0 : i32
    return %c0_i32, %c0_i32_0, %c0_i32_1 : i32, i32, i32
  }
  func.func @transform_4(%arg0: i32) -> (i32, i32) {
    %c0_i32 = arith.constant 0 : i32
    %c0_i32_0 = arith.constant 0 : i32
    return %arg0, %c0_i32 : i32, i32
  }
}

</mosaic_0001>

<bundles_post_ra>
// kernel: _forward_padded.1
= control target key start
LH: loop header
LB: loop body
LE: loop exit
PB: predicated region body
PF: predicated region fallthrough
CT: control target
= control target key end

     0   :  { %9 = vsyncpa [#allocation3], 0  ;;  %s1612_s15 = smov 0   ;;  %s1722_s0 = inlined_call_operand.vmem [shape: f32[128,64], index: 0, kind: input, shape index: {}]   ;;  %s1723_s1 = inlined_call_operand.vmem [shape: bf16[64,128], index: 1, kind: input, shape index: {}]   ;;  %s1724_s2 = inlined_call_operand.hbm [shape: bf16[5,128,128], index: 2, kind: input, shape index: {}]   ;;  %s1725_s3 = inlined_call_operand.vmem [shape: f32[6,1,128], index: 3, kind: input, shape index: {}]   ;;  %s1726_s4 = inlined_call_operand.vmem [shape: f32[128,128], index: 4, kind: output, shape index: {}]  }
   0x1 LB: > { %s1203_s16 = sadd.s32 4294967295, %s1582_s15   ;;  %p1205_p0 = scmp.ge.s32.totalorder %s1582_s15, 1  ;;  %s1582_s15 = sphi %s1612_s15, %s15_s15  }
   0x2   : > { %p135_p1 = scmp.lt.s32.totalorder %s1582_s15, 3  ;;  %s1584_s17 = smov [#allocation2]  }
   0x3   : > { %s150_s18 = sshll.u32 %s1584_s17, 4  ;;  %p1626_p3 = scmp.eq.s32.totalorder %s1203_s16, 0  ;;  %s151_s18 = int_to_ptr.vmem [resolvable:$true] %s150_s18 }
   0x4   : > { %p1620_p2 = pnand %p1205_p0, %p135_p1  ;;  %s1544_s24 = scalar_lea.hbm %s1724_s2, 5120 }
   0x5   : > { %s1731_s20 = scalar_select %p1626_p3, 1, 0 }
   0x6   : > { %s1730_s19 = scalar_select %p1620_p2, 1, 0 }
   0x7   : > { %p1483_p4 = pneg %p1620_p2  ;;  %p1545_p6 = scmp.ne.s32.totalorder %s1724_s2, %s1544_s24 }
   0x8   : > { %p1551_p10 = scmp.lt.u32.totalorder %s1544_s24, %s1724_s2 }
   0x9   : > { %p1634_p5 = pnand %p1626_p3, %p1483_p4 }
   0xb   : > { %p1546_p7 = pneg %p1634_p5 }
   0xd   : > { %p1547_p8 = pnand %p1546_p7, %p1545_p6 }
   0xf   : > { %p1548_p9 = pneg %p1547_p8 }
  0x11   : > { %p1553_p11 = pnand %p1551_p10, %p1548_p9 }
  0x13   : > { %1556 = shalt.err (!%p1553_p11)
}
  0x14   : > { %s1557_s29 = scalar_lea.vmem %s151_s18, 5120  ;;  %p1565_p1 = scmp.lt.s32.totalorder %s151_s18, %s151_s18 }
  0x15   : > { %p1558_p12 = scmp.ne.s32.totalorder %s151_s18, %s1557_s29  ;;  %p1566_p4 = scmp.lt.s32.totalorder %s1557_s29, %s1557_s29 }
  0x17   : > { %p1560_p13 = pnand %p1558_p12, %p1546_p7  ;;  %p1567_p3 = por %p1566_p4, %p1565_p1 }
  0x19   : > { %p1561_p0 = pneg %p1560_p13 }
  0x1b   : > { %p1568_p2 = pnand %p1567_p3, %p1561_p0 }
  0x1d   : > { %1571 = shalt.err (!%p1568_p2)
}
  0x1e   : > { %s1585_s30 = smov 64   ;;  %s1586_s5 = smov 4  }
  0x1f   : > { %1486 = dma.hbm_to_vmem [thread:$0]  (!%p1634_p5), %s1724_s2, 5120, %s151_s18, [#allocation3], %s1585_s30, %s1585_s30, %s1586_s5  }
  0x20   : > { %p1733_p6 = scmp.ne.s32.totalorder %s1730_s19, 0 }
  0x21   : > { %p1734_p8 = scmp.ne.s32.totalorder (!%p1733_p6), %s1731_s20, 0 }
  0x22   : > { %178 = sbr.rel (%p1733_p6) target bundleno = 1403 (0x57b), region = 36 }
  0x29   : > { %1577 = dma.done.wait (%p1734_p8), [#allocation3], 5120  }
  0x2a   : > { %1579 = vsyncadd (%p1734_p8), [#allocation3], 4294962176  ;;  %s1210_s8 = sshll.u32 %s1203_s16, 3  ;;  %v1500_v0 = vld [vmem:[%s1723_s1] sm:$0xff]   ;;  %v1501_v1 = vld [vmem:[%s1723_s1 + $0x8] sm:$0xff]   ;;  %vm268_vm0 = vcmask 523264  }
  0x2b   : > { %p205_p2 = scmp.lt.s32.totalorder %s1210_s8, 15  ;;  %1343 = vmatprep.subr.bf16.mxu0 %v1500_v0  ;;  %v1502_v2 = vld [vmem:[%s1723_s1 + $0x10] sm:$0xff]   ;;  %v1503_v6 = vld [vmem:[%s1723_s1 + $0x18] sm:$0xff]   ;;  %v1504_v7 = vld [vmem:[#allocation2] sm:$0xff]  }
  0x2c   : > { %1344 = vmatpush3.bf16.msra.mxu0 %v1500_v0  ;;  %v1505_v8 = vld [vmem:[#allocation2 + $0x8] sm:$0xff]   ;;  %1359 = vmatprep.subr.bf16.mxu1 %v1504_v7  ;;  %v1506_v13 = vld [vmem:[#allocation2 + $0x10] sm:$0xff]   ;;  %v1507_v14 = vld [vmem:[#allocation2 + $0x18] sm:$0xff]  }
  0x2d   : > { %s1736_s8 = smov (!%p205_p2, %s1210_s8), 15  ;;  %1345 = vmatprep.subr.bf16.mxu0 %v1501_v1  ;;  %1360 = vmatpush3.bf16.msra.mxu1 %v1504_v7  ;;  %v1508_v19 = vld [vmem:[#allocation2 + $0x20] sm:$0xff]   ;;  %v1509_v21 = vld [vmem:[#allocation2 + $0x28] sm:$0xff]   ;;  %v1510_v22 = vld [vmem:[#allocation2 + $0x30] sm:$0xff]  }
  0x2e   : > { %s1211_s9 = sshll.u32 %s1736_s8, 3  ;;  %1361 = vmatprep.subr.bf16.mxu1 %v1505_v8  ;;  %v1511_v23 = vld [vmem:[#allocation2 + $0x38] sm:$0xff]   ;;  %v1512_v24 = vld [vmem:[#allocation2 + $0x40] sm:$0xff]   ;;  %v1513_v25 = vld [vmem:[#allocation2 + $0x48] sm:$0xff]  }
  0x2f   : > { %s1676_s18 = scalar_lea.vmem %s1722_s0, %s1211_s9  ;;  %v1514_v26 = vld [vmem:[#allocation2 + $0x50] sm:$0xff]   ;;  %v1515_v27 = vld [vmem:[#allocation2 + $0x58] sm:$0xff]   ;;  %v1516_v28 = vld [vmem:[#allocation2 + $0x60] sm:$0xff]   ;;  %s214_s12 = scalar_lea.vmem %s1726_s4, %s1211_s9 }
  0x30   : > { %v217_v3 = vld [vmem:[%s1676_s18] sm:$0xff]  ;;  %v218_v4 = vld [vmem:[%s1676_s18 + $0x8] sm:$0xff]  ;;  %1346 = vmatpush3.bf16.msra.mxu0 %v1501_v1  ;;  %v219_v9 = vld [vmem:[%s1676_s18 + $0x10] sm:$0xff] }
  0x31   : > { %v234_v5 = vpack.c.bf16 %v218_v4, %v217_v3  ;;  %1347 = vmatprep.subr.bf16.mxu0 %v1502_v2  ;;  %v220_v10 = vld [vmem:[%s1676_s18 + $0x18] sm:$0xff]  ;;  %v221_v11 = vld [vmem:[%s1676_s18 + $0x20] sm:$0xff]  ;;  %v222_v12 = vld [vmem:[%s1676_s18 + $0x28] sm:$0xff]  ;;  %1362 = vmatpush3.bf16.msra.mxu1 %v1505_v8 }
  0x32   : > { %v235_v15 = vpack.c.bf16 %v220_v10, %v219_v9  ;;  %v236_v16 = vpack.c.bf16 %v222_v12, %v221_v11  ;;  %1363 = vmatprep.subr.bf16.mxu1 %v1506_v13  ;;  %v223_v17 = vld [vmem:[%s1676_s18 + $0x30] sm:$0xff]  ;;  %v224_v18 = vld [vmem:[%s1676_s18 + $0x38] sm:$0xff]  ;;  %v1214_v29 = vld [vmem:[%s1725_s3] ss:$0 sm:$0xff] }
  0x33   : > { %1351 = vmatprep.mubr.msk.bf16.mxu0 %vm268_vm0, %v234_v5  ;;  %v237_v20 = vpack.c.bf16 %v224_v18, %v223_v17  ;;  %v1518_v3 = vld [vmem:[#allocation2 + $0x70] sm:$0xff]   ;;  %v1519_v4 = vld [vmem:[#allocation2 + $0x78] sm:$0xff]   ;;  %v1520_v5 = vld [vmem:[#allocation2 + $0x80] sm:$0xff]  }
  0x34   : > { %1348 = vmatpush3.bf16.msra.mxu0 %v1502_v2  ;;  %v1517_v2 = vld [vmem:[#allocation2 + $0x68] sm:$0xff]   ;;  %v1522_v7 = vld [vmem:[#allocation2 + $0x90] sm:$0xff]   ;;  %v1523_v8 = vld [vmem:[#allocation2 + $0x98] sm:$0xff]  }
  0x35   : > { %1349 = vmatprep.subr.bf16.mxu0 %v1503_v6  ;;  %1364 = vmatpush3.bf16.msra.mxu1 %v1506_v13  ;;  %v1524_v9 = vld [vmem:[#allocation2 + $0xa0] sm:$0xff]   ;;  %v1525_v10 = vld [vmem:[#allocation2 + $0xa8] sm:$0xff]  }
  0x36   : > { %1365 = vmatprep.subr.bf16.mxu1 %v1507_v14  ;;  %v1224_v11 = vld [vmem:[%s1725_s3 + $0x1] ss:$0 sm:$0xff] }
  0x38   : > { %1350 = vmatpush3.bf16.msra.mxu0 %v1503_v6  ;;  %v1521_v6 = vld [vmem:[#allocation2 + $0x88] sm:$0xff]  }
  0x39   : > { %1366 = vmatpush3.bf16.msra.mxu1 %v1507_v14  ;;  %1383 = vmatprep.subr.bf16.mxu0 %v1512_v24 }
  0x3a   : > { %1367 = vmatprep.subr.bf16.mxu1 %v1508_v19 }
  0x3b   : > { %1352 = vmatmul.mubr.msk.bf16.vlgmr.msra.gmra.mrb[0].mxu0 %vm268_vm0, %v235_v15 }
  0x3c   : > { %1355 = vmatprep.mubr.msk.bf16.mxu0 %vm268_vm0, %v236_v16  ;;  %1384 = vmatpush3.bf16.msra.mxu0 %v1512_v24 }
  0x3d   : > { %1368 = vmatpush3.bf16.msra.mxu1 %v1508_v19  ;;  %1385 = vmatprep.subr.bf16.mxu0 %v1513_v25 }
  0x3e   : > { %1369 = vmatprep.subr.bf16.mxu1 %v1509_v21 }
  0x40   : > { %1386 = vmatpush3.bf16.msra.mxu0 %v1513_v25 }
  0x41   : > { %1370 = vmatpush3.bf16.msra.mxu1 %v1509_v21  ;;  %1387 = vmatprep.subr.bf16.mxu0 %v1514_v26 }
  0x42   : > { %1371 = vmatprep.subr.bf16.mxu1 %v1510_v22 }
  0x43   : > { %1356 = vmatmul.mubr.msk.bf16.gmra.mrb[4].mxu0 %vm268_vm0, %v237_v20 }
  0x44   : > { %1388 = vmatpush3.bf16.msra.mxu0 %v1514_v26 }
  0x45   : > { %1372 = vmatpush3.bf16.msra.mxu1 %v1510_v22  ;;  %1389 = vmatprep.subr.bf16.mxu0 %v1515_v27 }
  0x46   : > { %1373 = vmatprep.subr.bf16.mxu1 %v1511_v23 }
  0x48   : > { %1390 = vmatpush3.bf16.msra.mxu0 %v1515_v27 }
  0x49   : > { %1374 = vmatpush3.bf16.msra.mxu1 %v1511_v23  ;;  %1391 = vmatprep.subr.bf16.mxu0 %v1516_v28 }
  0x4a   : > { %1407 = vmatprep.subr.bf16.mxu1 %v1520_v5 }
  0x4c   : > { %1392 = vmatpush3.bf16.msra.mxu0 %v1516_v28 }
  0x4d   : > { %1393 = vmatprep.subr.bf16.mxu0 %v1517_v2 }
  0x50   : > { %1394 = vmatpush3.bf16.msra.mxu0 %v1517_v2 }
  0x51   : > { %1395 = vmatprep.subr.bf16.mxu0 %v1518_v3 }
  0x54   : > { %1396 = vmatpush3.bf16.msra.mxu0 %v1518_v3 }
  0x55   : > { %1397 = vmatprep.subr.bf16.mxu0 %v1519_v4 }
  0x58   : > { %1398 = vmatpush3.bf16.msra.mxu0 %v1519_v4 }
 0x10e   : > { %v1353_v30 = vpop.f32.mrb[0].mxu0 }
 0x10f   : > { %v324_v31 = vadd.f32 %v1353_v30, %v1214_v29  ;;  %v315_v32 = vpop.f32.mrb[1].mxu0 }
 0x110   : > { %v316_v33 = vadd.f32 %v1214_v29, %v315_v32  ;;  %v1354_v34 = vpop.f32.mrb[2].mxu0 }
 0x111   : > { %v348_v35 = vmul.f32 0.1, %v324_v31  ;;  %v327_v36 = vadd.f32 %v1354_v34, %v1214_v29  ;;  %v318_v37 = vpop.f32.mrb[3].mxu0 }
 0x112   : > { %v346_v38 = vmul.f32 0.1, %v316_v33  ;;  %v319_v39 = vadd.f32 %v1214_v29, %v318_v37 }
 0x113   : > { %v349_v40 = vmul.f32 0.1, %v327_v36  ;;  %v356_v42 = vmax.f32 %v324_v31, %v348_v35 }
 0x114   : > { %v347_v41 = vmul.f32 0.1, %v319_v39  ;;  %v354_v45 = vmax.f32 %v316_v33, %v346_v38 }
 0x115   : > { %v357_v43 = vmax.f32 %v327_v36, %v349_v40 }
 0x116   : > { %v1357_v44 = vpop.f32.mrb[4].mxu0  ;;  %v355_v46 = vmax.f32 %v319_v39, %v347_v41 }
 0x117   : > { %v340_v47 = vadd.f32 %v1357_v44, %v1214_v29  ;;  %v331_v48 = vpop.f32.mrb[5].mxu0  ;;  %v381_v49 = vpack.c.bf16 %v357_v43, %v356_v42 }
 0x118   : > { %v332_v50 = vadd.f32 %v1214_v29, %v331_v48  ;;  %v1358_v51 = vpop.f32.mrb[6].mxu0  ;;  %v380_v52 = vpack.c.bf16 %v355_v46, %v354_v45  ;;  %v1526_v48 = vld [vmem:[#allocation2 + $0xb0] sm:$0xff]  }
 0x119   : > { %v352_v53 = vmul.f32 0.1, %v340_v47  ;;  %v343_v54 = vadd.f32 %v1358_v51, %v1214_v29  ;;  %v334_v55 = vpop.f32.mrb[7].mxu0  ;;  %v1529_v51 = vld [vmem:[#allocation2 + $0xc8] sm:$0xff]  }
 0x11a   : > { %v350_v56 = vmul.f32 0.1, %v332_v50  ;;  %v335_v57 = vadd.f32 %v1214_v29, %v334_v55  ;;  %1375 = vmatprep.mubr.bf16.mxu1 %v380_v52  ;;  %v1530_v52 = vld [vmem:[#allocation2 + $0xd0] sm:$0xff]   ;;  %v1234_v55 = vld [vmem:[%s1725_s3 + $0x2] ss:$0 sm:$0xff] }
 0x11b   : > { %v353_v58 = vmul.f32 0.1, %v343_v54  ;;  %1376 = vmatmul.mubr.bf16.vlgmr.msra.gmra.mrb[0].mxu1 %v381_v49  ;;  %v360_v60 = vmax.f32 %v340_v47, %v352_v53  ;;  %v1527_v49 = vld [vmem:[#allocation2 + $0xb8] sm:$0xff]  }
 0x11c   : > { %v351_v59 = vmul.f32 0.1, %v335_v57  ;;  %v358_v62 = vmax.f32 %v332_v50, %v350_v56  ;;  %1408 = vmatpush3.bf16.msra.mxu1 %v1520_v5  ;;  %v1528_v50 = vld [vmem:[#allocation2 + $0xc0] sm:$0xff]   ;;  %v1531_v53 = vld [vmem:[#allocation2 + $0xd8] sm:$0xff]  }
 0x11d   : > { %v361_v61 = vmax.f32 %v343_v54, %v353_v58  ;;  %1409 = vmatprep.subr.bf16.mxu1 %v1521_v6  ;;  %1431 = vmatprep.subr.bf16.mxu0 %v1528_v50  ;;  %v1532_v54 = vld [vmem:[#allocation2 + $0xe0] sm:$0xff]  }
 0x11e   : > { %v359_v63 = vmax.f32 %v335_v57, %v351_v59 }
 0x11f   : > { %v383_v0 = vpack.c.bf16 %v361_v61, %v360_v60 }
 0x120   : > { %v382_v1 = vpack.c.bf16 %v359_v63, %v358_v62  ;;  %1410 = vmatpush3.bf16.msra.mxu1 %v1521_v6 }
 0x121   : > { %1411 = vmatprep.subr.bf16.mxu1 %v1522_v7 }
 0x122   : > { %1379 = vmatprep.mubr.bf16.mxu1 %v382_v1 }
 0x123   : > { %1380 = vmatmul.mubr.bf16.gmra.mrb[4].mxu1 %v383_v0 }
 0x124   : > { %1412 = vmatpush3.bf16.msra.mxu1 %v1522_v7 }
 0x125   : > { %1413 = vmatprep.subr.bf16.mxu1 %v1523_v8 }
 0x128   : > { %1414 = vmatpush3.bf16.msra.mxu1 %v1523_v8 }
 0x129   : > { %1415 = vmatprep.subr.bf16.mxu1 %v1524_v9 }
 0x12c   : > { %1416 = vmatpush3.bf16.msra.mxu1 %v1524_v9 }
 0x12d   : > { %1417 = vmatprep.subr.bf16.mxu1 %v1525_v10 }
 0x130   : > { %1418 = vmatpush3.bf16.msra.mxu1 %v1525_v10 }
 0x131   : > { %1419 = vmatprep.subr.bf16.mxu1 %v1526_v48 }
 0x134   : > { %1420 = vmatpush3.bf16.msra.mxu1 %v1526_v48 }
 0x135   : > { %1421 = vmatprep.subr.bf16.mxu1 %v1527_v49 }
 0x138   : > { %1422 = vmatpush3.bf16.msra.mxu1 %v1527_v49 }
 0x1ee   : > { %v1377_v12 = vpop.f32.mrb[0].mxu1 }
 0x1ef   : > { %v481_v13 = vadd.f32 %v1377_v12, %v1224_v11  ;;  %v472_v14 = vpop.f32.mrb[1].mxu1 }
 0x1f0   : > { %v473_v15 = vadd.f32 %v1224_v11, %v472_v14  ;;  %v1378_v16 = vpop.f32.mrb[2].mxu1 }
 0x1f1   : > { %v505_v17 = vmul.f32 0.1, %v481_v13  ;;  %v484_v18 = vadd.f32 %v1378_v16, %v1224_v11  ;;  %v475_v19 = vpop.f32.mrb[3].mxu1 }
 0x1f2   : > { %v503_v20 = vmul.f32 0.1, %v473_v15  ;;  %v476_v21 = vadd.f32 %v1224_v11, %v475_v19 }
 0x1f3   : > { %v506_v22 = vmul.f32 0.1, %v484_v18  ;;  %v513_v24 = vmax.f32 %v481_v13, %v505_v17 }
 0x1f4   : > { %v504_v23 = vmul.f32 0.1, %v476_v21  ;;  %v511_v26 = vmax.f32 %v473_v15, %v503_v20  ;;  %v1533_v20 = vld [vmem:[#allocation2 + $0xe8] sm:$0xff]  }
 0x1f5   : > { %v514_v25 = vmax.f32 %v484_v18, %v506_v22  ;;  %v1535_v22 = vld [vmem:[#allocation2 + $0xf8] sm:$0xff]  }
 0x1f6   : > { %v512_v27 = vmax.f32 %v476_v21, %v504_v23  ;;  %v1381_v28 = vpop.f32.mrb[4].mxu1  ;;  %v1534_v21 = vld [vmem:[#allocation2 + $0xf0] sm:$0xff]   ;;  %v1536_v23 = vld [vmem:[#allocation2 + $0x100] sm:$0xff]  }
 0x1f7   : > { %v539_v29 = vpack.c.bf16 %v514_v25, %v513_v24  ;;  %v497_v30 = vadd.f32 %v1381_v28, %v1224_v11  ;;  %v488_v31 = vpop.f32.mrb[5].mxu1  ;;  %v1537_v24 = vld [vmem:[#allocation2 + $0x108] sm:$0xff]   ;;  %1455 = vmatprep.subr.bf16.mxu1 %v1536_v23  ;;  %v1538_v25 = vld [vmem:[#allocation2 + $0x110] sm:$0xff]   ;;  %v1244_v28 = vld [vmem:[%s1725_s3 + $0x3] ss:$0 sm:$0xff] }
 0x1f8   : > { %v489_v32 = vadd.f32 %v1224_v11, %v488_v31  ;;  %v1382_v33 = vpop.f32.mrb[6].mxu1  ;;  %v538_v34 = vpack.c.bf16 %v512_v27, %v511_v26  ;;  %v1539_v26 = vld [vmem:[#allocation2 + $0x118] sm:$0xff]   ;;  %v1540_v27 = vld [vmem:[#allocation2 + $0x120] sm:$0xff]  }
 0x1f9   : > { %v509_v35 = vmul.f32 0.1, %v497_v30  ;;  %v500_v36 = vadd.f32 %v1382_v33, %v1224_v11  ;;  %v491_v37 = vpop.f32.mrb[7].mxu1 }
 0x1fa   : > { %v507_v38 = vmul.f32 0.1, %v489_v32  ;;  %v492_v39 = vadd.f32 %v1224_v11, %v491_v37  ;;  %1399 = vmatprep.mubr.bf16.mxu0 %v538_v34 }
 0x1fb   : > { %v510_v40 = vmul.f32 0.1, %v500_v36  ;;  %1400 = vmatmul.mubr.bf16.vlgmr.msra.gmra.mrb[8].mxu0 %v539_v29  ;;  %v517_v42 = vmax.f32 %v497_v30, %v509_v35 }
 0x1fc   : > { %v508_v41 = vmul.f32 0.1, %v492_v39  ;;  %v515_v44 = vmax.f32 %v489_v32, %v507_v38  ;;  %1432 = vmatpush3.bf16.msra.mxu0 %v1528_v50 }
 0x1fd   : > { %v518_v43 = vmax.f32 %v500_v36, %v510_v40  ;;  %1433 = vmatprep.subr.bf16.mxu0 %v1529_v51 }
 0x1fe   : > { %v516_v45 = vmax.f32 %v492_v39, %v508_v41 }
 0x1ff   : > { %v541_v46 = vpack.c.bf16 %v518_v43, %v517_v42 }
 0x200   : > { %v540_v47 = vpack.c.bf16 %v516_v45, %v515_v44  ;;  %1434 = vmatpush3.bf16.msra.mxu0 %v1529_v51 }
 0x201   : > { %1435 = vmatprep.subr.bf16.mxu0 %v1530_v52 }
 0x202   : > { %1403 = vmatprep.mubr.bf16.mxu0 %v540_v47 }
 0x203   : > { %1404 = vmatmul.mubr.bf16.gmra.mrb[12].mxu0 %v541_v46 }
 0x204   : > { %1436 = vmatpush3.bf16.msra.mxu0 %v1530_v52 }
 0x205   : > { %1437 = vmatprep.subr.bf16.mxu0 %v1531_v53 }
 0x208   : > { %1438 = vmatpush3.bf16.msra.mxu0 %v1531_v53 }
 0x209   : > { %1439 = vmatprep.subr.bf16.mxu0 %v1532_v54 }
 0x20c   : > { %1440 = vmatpush3.bf16.msra.mxu0 %v1532_v54 }
 0x20d   : > { %1441 = vmatprep.subr.bf16.mxu0 %v1533_v20 }
 0x210   : > { %1442 = vmatpush3.bf16.msra.mxu0 %v1533_v20 }
 0x211   : > { %1443 = vmatprep.subr.bf16.mxu0 %v1534_v21 }
 0x214   : > { %1444 = vmatpush3.bf16.msra.mxu0 %v1534_v21 }
 0x215   : > { %1445 = vmatprep.subr.bf16.mxu0 %v1535_v22 }
 0x218   : > { %1446 = vmatpush3.bf16.msra.mxu0 %v1535_v22 }
 0x2ce   : > { %v1401_v56 = vpop.f32.mrb[8].mxu0 }
 0x2cf   : > { %v639_v57 = vadd.f32 %v1401_v56, %v1234_v55  ;;  %v630_v58 = vpop.f32.mrb[9].mxu0 }
 0x2d0   : > { %v631_v59 = vadd.f32 %v1234_v55, %v630_v58  ;;  %v1402_v60 = vpop.f32.mrb[10].mxu0 }
 0x2d1   : > { %v642_v61 = vadd.f32 %v1402_v60, %v1234_v55  ;;  %v633_v62 = vpop.f32.mrb[11].mxu0  ;;  %v663_v0 = vmax.f32 %v639_v57, 0.0 }
 0x2d2   : > { %v634_v63 = vadd.f32 %v1234_v55, %v633_v62  ;;  %v661_v2 = vmax.f32 %v631_v59, 0.0 }
 0x2d3   : > { %v664_v1 = vmax.f32 %v642_v61, 0.0 }
 0x2d4   : > { %v662_v3 = vmax.f32 %v634_v63, 0.0 }
 0x2d5   : > { %v689_v4 = vpack.c.bf16 %v664_v1, %v663_v0  ;;  %v1541_v1 = vld [vmem:[#allocation2 + $0x128] sm:$0xff]  }
 0x2d6   : > { %v688_v5 = vpack.c.bf16 %v662_v3, %v661_v2  ;;  %v1405_v6 = vpop.f32.mrb[12].mxu0  ;;  %v1542_v2 = vld [vmem:[#allocation2 + $0x130] sm:$0xff]   ;;  %v1543_v3 = vld [vmem:[#allocation2 + $0x138] sm:$0xff]  }
 0x2d7   : > { %v655_v7 = vadd.f32 %v1405_v6, %v1234_v55  ;;  %v646_v8 = vpop.f32.mrb[13].mxu0 }
 0x2d8   : > { %v647_v9 = vadd.f32 %v1234_v55, %v646_v8  ;;  %v1406_v10 = vpop.f32.mrb[14].mxu0  ;;  %1423 = vmatprep.mubr.bf16.mxu1 %v688_v5 }
 0x2d9   : > { %v658_v11 = vadd.f32 %v1406_v10, %v1234_v55  ;;  %v649_v12 = vpop.f32.mrb[15].mxu0  ;;  %1424 = vmatmul.mubr.bf16.vlgmr.msra.gmra.mrb[8].mxu1 %v689_v4  ;;  %v667_v14 = vmax.f32 %v655_v7, 0.0  ;;  %v1254_v4 = vld [vmem:[%s1725_s3 + $0x4] ss:$0 sm:$0xff] }
 0x2da   : > { %v650_v13 = vadd.f32 %v1234_v55, %v649_v12  ;;  %v665_v16 = vmax.f32 %v647_v9, 0.0  ;;  %1456 = vmatpush3.bf16.msra.mxu1 %v1536_v23 }
 0x2db   : > { %v668_v15 = vmax.f32 %v658_v11, 0.0  ;;  %1457 = vmatprep.subr.bf16.mxu1 %v1537_v24 }
 0x2dc   : > { %v666_v17 = vmax.f32 %v650_v13, 0.0 }
 0x2dd   : > { %v691_v18 = vpack.c.bf16 %v668_v15, %v667_v14 }
 0x2de   : > { %v690_v19 = vpack.c.bf16 %v666_v17, %v665_v16  ;;  %1458 = vmatpush3.bf16.msra.mxu1 %v1537_v24 }
 0x2df   : > { %1459 = vmatprep.subr.bf16.mxu1 %v1538_v25 }
 0x2e0   : > { %1427 = vmatprep.mubr.bf16.mxu1 %v690_v19 }
 0x2e1   : > { %1428 = vmatmul.mubr.bf16.gmra.mrb[12].mxu1 %v691_v18 }
 0x2e2   : > { %1460 = vmatpush3.bf16.msra.mxu1 %v1538_v25 }
 0x2e3   : > { %1461 = vmatprep.subr.bf16.mxu1 %v1539_v26 }
 0x2e6   : > { %1462 = vmatpush3.bf16.msra.mxu1 %v1539_v26 }
 0x2e7   : > { %1463 = vmatprep.subr.bf16.mxu1 %v1540_v27 }
 0x2ea   : > { %1464 = vmatpush3.bf16.msra.mxu1 %v1540_v27 }
 0x2eb   : > { %1465 = vmatprep.subr.bf16.mxu1 %v1541_v1 }
 0x2ee   : > { %1466 = vmatpush3.bf16.msra.mxu1 %v1541_v1 }
 0x2ef   : > { %1467 = vmatprep.subr.bf16.mxu1 %v1542_v2 }
 0x2f2   : > { %1468 = vmatpush3.bf16.msra.mxu1 %v1542_v2 }
 0x2f3   : > { %1469 = vmatprep.subr.bf16.mxu1 %v1543_v3 }
 0x2f6   : > { %1470 = vmatpush3.bf16.msra.mxu1 %v1543_v3 }
 0x3ac   : > { %v1425_v29 = vpop.f32.mrb[8].mxu1 }
 0x3ad   : > { %v789_v30 = vadd.f32 %v1425_v29, %v1244_v28  ;;  %v780_v31 = vpop.f32.mrb[9].mxu1 }
 0x3ae   : > { %v781_v32 = vadd.f32 %v1244_v28, %v780_v31  ;;  %v1426_v33 = vpop.f32.mrb[10].mxu1 }
 0x3af   : > { %v813_v34 = vmul.f32 0.1, %v789_v30  ;;  %v792_v35 = vadd.f32 %v1426_v33, %v1244_v28  ;;  %v783_v36 = vpop.f32.mrb[11].mxu1 }
 0x3b0   : > { %v811_v37 = vmul.f32 0.1, %v781_v32  ;;  %v784_v38 = vadd.f32 %v1244_v28, %v783_v36 }
 0x3b1   : > { %v814_v39 = vmul.f32 0.1, %v792_v35  ;;  %v821_v41 = vmax.f32 %v789_v30, %v813_v34 }
 0x3b2   : > { %v812_v40 = vmul.f32 0.1, %v784_v38  ;;  %v819_v43 = vmax.f32 %v781_v32, %v811_v37 }
 0x3b3   : > { %v822_v42 = vmax.f32 %v792_v35, %v814_v39 }
 0x3b4   : > { %v820_v44 = vmax.f32 %v784_v38, %v812_v40  ;;  %v1429_v45 = vpop.f32.mrb[12].mxu1 }
 0x3b5   : > { %v847_v46 = vpack.c.bf16 %v822_v42, %v821_v41  ;;  %v805_v47 = vadd.f32 %v1429_v45, %v1244_v28  ;;  %v796_v48 = vpop.f32.mrb[13].mxu1  ;;  %v1264_v41 = vld [vmem:[%s1725_s3 + $0x5] ss:$0 sm:$0xff] }
 0x3b6   : > { %v797_v49 = vadd.f32 %v1244_v28, %v796_v48  ;;  %v1430_v50 = vpop.f32.mrb[14].mxu1  ;;  %v846_v51 = vpack.c.bf16 %v820_v44, %v819_v43 }
 0x3b7   : > { %v817_v52 = vmul.f32 0.1, %v805_v47  ;;  %v808_v53 = vadd.f32 %v1430_v50, %v1244_v28  ;;  %v799_v54 = vpop.f32.mrb[15].mxu1 }
 0x3b8   : > { %v815_v55 = vmul.f32 0.1, %v797_v49  ;;  %v800_v56 = vadd.f32 %v1244_v28, %v799_v54  ;;  %1447 = vmatprep.mubr.bf16.mxu0 %v846_v51 }
 0x3b9   : > { %v818_v57 = vmul.f32 0.1, %v808_v53  ;;  %1448 = vmatmul.mubr.bf16.vlgmr.msra.gmra.mrb[16].mxu0 %v847_v46  ;;  %v825_v59 = vmax.f32 %v805_v47, %v817_v52 }
 0x3ba   : > { %v816_v58 = vmul.f32 0.1, %v800_v56  ;;  %v823_v61 = vmax.f32 %v797_v49, %v815_v55 }
 0x3bb   : > { %v826_v60 = vmax.f32 %v808_v53, %v818_v57 }
 0x3bc   : > { %v824_v62 = vmax.f32 %v800_v56, %v816_v58 }
 0x3bd   : > { %v849_v63 = vpack.c.bf16 %v826_v60, %v825_v59 }
 0x3be   : > { %v848_v0 = vpack.c.bf16 %v824_v62, %v823_v61 }
 0x3c0   : > { %1451 = vmatprep.mubr.bf16.mxu0 %v848_v0 }
 0x3c1   : > { %1452 = vmatmul.mubr.bf16.gmra.mrb[20].mxu0 %v849_v63 }
 0x48c   : > { %v1449_v5 = vpop.f32.mrb[16].mxu0 }
 0x48d   : > { %v947_v6 = vadd.f32 %v1449_v5, %v1254_v4  ;;  %v938_v7 = vpop.f32.mrb[17].mxu0 }
 0x48e   : > { %v939_v8 = vadd.f32 %v1254_v4, %v938_v7  ;;  %v1450_v9 = vpop.f32.mrb[18].mxu0 }
 0x48f   : > { %v971_v10 = vmul.f32 0.1, %v947_v6  ;;  %v950_v11 = vadd.f32 %v1450_v9, %v1254_v4  ;;  %v941_v12 = vpop.f32.mrb[19].mxu0 }
 0x490   : > { %v969_v13 = vmul.f32 0.1, %v939_v8  ;;  %v942_v14 = vadd.f32 %v1254_v4, %v941_v12 }
 0x491   : > { %v972_v15 = vmul.f32 0.1, %v950_v11  ;;  %v979_v17 = vmax.f32 %v947_v6, %v971_v10 }
 0x492   : > { %v970_v16 = vmul.f32 0.1, %v942_v14  ;;  %v977_v19 = vmax.f32 %v939_v8, %v969_v13 }
 0x493   : > { %v980_v18 = vmax.f32 %v950_v11, %v972_v15 }
 0x494   : > { %v978_v20 = vmax.f32 %v942_v14, %v970_v16  ;;  %v1453_v21 = vpop.f32.mrb[20].mxu0 }
 0x495   : > { %v1005_v22 = vpack.c.bf16 %v980_v18, %v979_v17  ;;  %v963_v23 = vadd.f32 %v1453_v21, %v1254_v4  ;;  %v954_v24 = vpop.f32.mrb[21].mxu0 }
 0x496   : > { %v955_v25 = vadd.f32 %v1254_v4, %v954_v24  ;;  %v1454_v26 = vpop.f32.mrb[22].mxu0  ;;  %v1004_v27 = vpack.c.bf16 %v978_v20, %v977_v19 }
 0x497   : > { %v975_v28 = vmul.f32 0.1, %v963_v23  ;;  %v966_v29 = vadd.f32 %v1454_v26, %v1254_v4  ;;  %v957_v30 = vpop.f32.mrb[23].mxu0 }
 0x498   : > { %v973_v31 = vmul.f32 0.1, %v955_v25  ;;  %v958_v32 = vadd.f32 %v1254_v4, %v957_v30  ;;  %1471 = vmatprep.mubr.bf16.mxu1 %v1004_v27 }
 0x499   : > { %v976_v33 = vmul.f32 0.1, %v966_v29  ;;  %1472 = vmatmul.mubr.bf16.vlgmr.msra.gmra.mrb[16].mxu1 %v1005_v22  ;;  %v983_v35 = vmax.f32 %v963_v23, %v975_v28 }
 0x49a   : > { %v974_v34 = vmul.f32 0.1, %v958_v32  ;;  %v981_v37 = vmax.f32 %v955_v25, %v973_v31 }
 0x49b   : > { %v984_v36 = vmax.f32 %v966_v29, %v976_v33 }
 0x49c   : > { %v982_v38 = vmax.f32 %v958_v32, %v974_v34 }
 0x49d   : > { %v1007_v39 = vpack.c.bf16 %v984_v36, %v983_v35 }
 0x49e   : > { %v1006_v40 = vpack.c.bf16 %v982_v38, %v981_v37 }
 0x4a0   : > { %1475 = vmatprep.mubr.bf16.mxu1 %v1006_v40 }
 0x4a1   : > { %1476 = vmatmul.mubr.bf16.gmra.mrb[20].mxu1 %v1007_v39 }
 0x56c   : > { %v1473_v42 = vpop.f32.mrb[16].mxu1 }
 0x56d   : > { %v1105_v43 = vadd.f32 %v1473_v42, %v1264_v41  ;;  %v1096_v44 = vpop.f32.mrb[17].mxu1 }
 0x56e   : > { %v1097_v45 = vadd.f32 %v1264_v41, %v1096_v44  ;;  %v1474_v46 = vpop.f32.mrb[18].mxu1 }
 0x56f   : > { %1129 = vst [vmem:[%s214_s12 + $0x10] sm:$0xff] %v1105_v43  ;;  %v1108_v47 = vadd.f32 %v1474_v46, %v1264_v41  ;;  %v1099_v48 = vpop.f32.mrb[19].mxu1 }
 0x570   : > { %1127 = vst [vmem:[%s214_s12] sm:$0xff] %v1097_v45  ;;  %v1100_v49 = vadd.f32 %v1264_v41, %v1099_v48 }
 0x571   : > { %1130 = vst [vmem:[%s214_s12 + $0x18] sm:$0xff] %v1108_v47 }
 0x572   : > { %1128 = vst [vmem:[%s214_s12 + $0x8] sm:$0xff] %v1100_v49 }
 0x574   : > { %v1477_v50 = vpop.f32.mrb[20].mxu1 }
 0x575   : > { %v1121_v51 = vadd.f32 %v1477_v50, %v1264_v41  ;;  %v1112_v52 = vpop.f32.mrb[21].mxu1 }
 0x576   : > { %v1113_v53 = vadd.f32 %v1264_v41, %v1112_v52  ;;  %v1478_v54 = vpop.f32.mrb[22].mxu1 }
 0x577   : > { %1133 = vst [vmem:[%s214_s12 + $0x30] sm:$0xff] %v1121_v51  ;;  %v1124_v55 = vadd.f32 %v1478_v54, %v1264_v41  ;;  %v1115_v56 = vpop.f32.mrb[23].mxu1 }
 0x578   : > { %1131 = vst [vmem:[%s214_s12 + $0x20] sm:$0xff] %v1113_v53  ;;  %v1116_v57 = vadd.f32 %v1264_v41, %v1115_v56 }
 0x579   : > { %1134 = vst [vmem:[%s214_s12 + $0x38] sm:$0xff] %v1124_v55 }
 0x57a   : > { %1132 = vst [vmem:[%s214_s12 + $0x28] sm:$0xff] %v1116_v57 }
 0x57b PF: > { %s15_s15 = sadd.s32 1, %s1582_s15  }
 0x57c   : > { %p12_p3 = scmp.ge.s32.totalorder %s15_s15, 4  }
 0x57e   :  { %14 = sbr.rel (!%p12_p3) target bundleno = 1 (0x1), region = 80 }
 0x585   :  { %1157 = vsyncpa [#allocation3], 1 }
 0x586   :  { %1159 = vsyncpa [#allocation3 + $0x1], 1 }

</bundles_post_ra>
